<compile_context>
chip_gen: v7x
topology: tpu7x:2x2x1
jax: 0.10.0
libtpu: 0.0.40
codegen_flags: <defaults>
</compile_context>

<pallas_src>
import functools

import jax
import jax.numpy as jnp
from jax.experimental import pallas as pl
from jax.experimental.pallas import tpu as pltpu


def _round_up(n, m):
    return ((n + m - 1) // m) * m


def _mish(x):
    # mish(x) = x * tanh(softplus(x)).  With n = e^x * (e^x + 2):
    #   tanh(softplus(x)) = n / (n + 2)
    # -> one exp + one (approximate, EUP) reciprocal instead of
    # exp + log1p + tanh.  For x > 20, softplus(x) == x (torch threshold=20)
    # and tanh(x) == 1 in f32, so mish(x) == x; the clamp keeps e^x*(e^x+2)
    # finite in the untaken branch of the where.
    e = jnp.exp(jnp.minimum(x, 20.0))
    n = e * (e + 2.0)
    return jnp.where(x > 20.0, x, x * n * pl.reciprocal(n + 2.0, approx=True))


def mlp_kernel(x_ref, w1_ref, b1_ref, w2_ref, b2_ref, w3_ref, b3_ref, o_ref):
    x = x_ref[...]                                                  # (bb, 15)
    # Layer 1: contract feature dims of W1 (12,15) and x (bb,15) -> (12, bb).
    # This folds the activation transpose into the matmul, so batch sits on
    # the lane axis for everything downstream (dense vregs for mish/sigmoid,
    # lane-dense output stores).
    h1 = jax.lax.dot_general(
        w1_ref[...], x, (((1,), (1,)), ((), ())),
        preferred_element_type=jnp.float32) + b1_ref[...]           # (12, bb)
    h1 = _mish(h1)
    h2 = _mish(jnp.dot(w2_ref[...], h1,
                       preferred_element_type=jnp.float32) + b2_ref[...])  # (8, bb)
    h3 = jnp.dot(w3_ref[...], h2,
                 preferred_element_type=jnp.float32) + b3_ref[...]  # (1, bb)
    # Exact sigmoid via a single EUP tanh (no exp + divide).
    o_ref[...] = 0.5 * (jnp.tanh(0.5 * h3) + 1.0)


@functools.partial(jax.jit, static_argnames=("block_b",))
def model_forward(x, params, *, block_b=16384):
    """x: (B, 15) float32. params: PyTorch-layout weights (out,in), biases (out,1)."""
    B, F = x.shape
    assert F == 15
    x = x.astype(jnp.float32)
    w1, b1, w2, b2, w3, b3 = (params[k] for k in ("w1", "b1", "w2", "b2", "w3", "b3"))

    # Batch block: multiple of 128 lanes (lane-dense output stores), capped by B.
    bb = _round_up(min(block_b, _round_up(B, 128)), 128)
    grid = (pl.cdiv(B, bb),)   # partial last block: garbage lanes, writes dropped

    # Weights/biases: constant index maps + single buffering -> VMEM-resident,
    # never re-DMA'd, no pointless double buffers.
    def resident(a):
        return pl.BlockSpec(a.shape, lambda i: (0, 0), pipeline_mode=pl.Buffered(1))

    # VMEM per step: 2x double-buffered (bb,15) input windows (lane-pad 15->128
    # => bb*512 B each), 2x (1->8, bb) output windows, resident weights (<64 KB)
    # and elementwise temporaries.  ~2x headroom, capped below v7x's 64 MiB
    # physical VMEM (raise for very large block_b on v5e/v6e's 128 MiB).
    vmem_limit = int(min(max(bb * 2560 + (4 << 20), 32 << 20), 56 << 20))

    flops = 2 * B * (15 * 12 + 12 * 8 + 8 * 1)
    transcendentals = B * (2 * (12 + 8) + 1)          # exp + rcp per mish, tanh sigmoid
    bytes_accessed = 4 * (B * (15 + 1)
                          + sum(int(a.size) for a in (w1, b1, w2, b2, w3, b3)))

    out = pl.pallas_call(
        mlp_kernel,
        out_shape=jax.ShapeDtypeStruct((1, B), jnp.float32),
        grid=grid,
        in_specs=[
            pl.BlockSpec((bb, 15), lambda i: (i, 0)),   # activations, tiled over batch
            resident(w1), resident(b1),
            resident(w2), resident(b2),
            resident(w3), resident(b3),
        ],
        out_specs=pl.BlockSpec((1, bb), lambda i: (0, i)),   # lane-dense output slab
        compiler_params=pltpu.CompilerParams(
            # Single batch axis marked parallel for pipelining / megacore (2 TCs
            # on v7x share the grid when it has >=2 steps).
            dimension_semantics=("parallel",),
            vmem_limit_bytes=vmem_limit,
        ),
        cost_estimate=pl.CostEstimate(
            flops=flops,
            transcendentals=transcendentals,
            bytes_accessed=bytes_accessed,
        ),
    )(x, w1, b1, w2, b2, w3, b3)

    return out.T                                        # (B, 1)


def init_params(key):
    """Deterministic init mimicking nn.Linear's U(-1/sqrt(fan_in), 1/sqrt(fan_in)).

    Weights stored PyTorch-style as (out_features, in_features); biases (out, 1).
    """
    dims = [(12, 15), (8, 12), (1, 8)]   # (out, in)
    params = {}
    for i, (fan_out, fan_in) in enumerate(dims, start=1):
        key, kw, kb = jax.random.split(key, 3)
        bound = 1.0 / jnp.sqrt(float(fan_in))
        params[f"w{i}"] = jax.random.uniform(
            kw, (fan_out, fan_in), jnp.float32, -bound, bound)
        params[f"b{i}"] = jax.random.uniform(
            kb, (fan_out, 1), jnp.float32, -bound, bound)
    return params


def _softplus_ref(x):
    # torch.nn.functional.softplus(beta=1, threshold=20)
    return jnp.where(x > 20.0, x, jnp.log1p(jnp.exp(jnp.minimum(x, 20.0))))


def _mish_ref(x):
    return x * jnp.tanh(_softplus_ref(x))


def reference_forward(x, params):
    """Pure-JAX reference (standard tanh/softplus Mish, exact sigmoid)."""
    h = _mish_ref(x @ params["w1"].T + params["b1"].T)
    h = _mish_ref(h @ params["w2"].T + params["b2"].T)
    return jax.nn.sigmoid(h @ params["w3"].T + params["b3"].T)


if __name__ == "__main__":
    key = jax.random.PRNGKey(0)
    key, kx = jax.random.split(key)
    params = init_params(key)

    # Small batch of Titanic feature rows (15 features each).
    B = 8
    x = jax.random.normal(kx, (B, 15), jnp.float32)
    out = jax.block_until_ready(model_forward(x, params))
    ref = reference_forward(x, params)
    assert out.shape == (B, 1)
    # Tolerance accounts for the approximate EUP reciprocal in the Mish rewrite.
    assert jnp.allclose(out, ref, atol=5e-3, rtol=5e-3), "mismatch vs reference (small B)"

    # Ragged larger batch: exercises the multi-step grid + partial last block.
    B2 = 300
    x2 = jax.random.normal(jax.random.PRNGKey(1), (B2, 15), jnp.float32)
    out2 = jax.block_until_ready(model_forward(x2, params, block_b=128))
    ref2 = reference_forward(x2, params)
    assert out2.shape == (B2, 1)
    assert jnp.allclose(out2, ref2, atol=5e-3, rtol=5e-3), "mismatch vs reference (grid B)"

    print("KERNEL_OK")
</pallas_src>

<mosaic_0001>
module attributes {stable_mosaic.version = 11 : i64} {
  func.func @mlp_kernel(%arg0: i32, %arg1: memref<128x15xf32, #tpu.memory_space<vmem>>, %arg2: memref<12x15xf32, #tpu.memory_space<vmem>>, %arg3: memref<12x1xf32, #tpu.memory_space<vmem>>, %arg4: memref<8x12xf32, #tpu.memory_space<vmem>>, %arg5: memref<8x1xf32, #tpu.memory_space<vmem>>, %arg6: memref<1x8xf32, #tpu.memory_space<vmem>>, %arg7: memref<1x1xf32, #tpu.memory_space<vmem>>, %arg8: memref<1x128xf32, #tpu.memory_space<vmem>>) attributes {dimension_semantics = [#tpu.dimension_semantics<parallel>], iteration_bounds = array<i64: 1>, scalar_prefetch = 0 : i64, scratch_operands = 0 : i64, tpu.core_type = #tpu.core_type<tc>, window_params = [{transform_indices = @transform_0, window_bounds = array<i64: 128, 15>}, {pipeline_mode = #tpu.pipeline_mode<synchronous>, transform_indices = @transform_1, window_bounds = array<i64: 12, 15>}, {pipeline_mode = #tpu.pipeline_mode<synchronous>, transform_indices = @transform_2, window_bounds = array<i64: 12, 1>}, {pipeline_mode = #tpu.pipeline_mode<synchronous>, transform_indices = @transform_3, window_bounds = array<i64: 8, 12>}, {pipeline_mode = #tpu.pipeline_mode<synchronous>, transform_indices = @transform_4, window_bounds = array<i64: 8, 1>}, {pipeline_mode = #tpu.pipeline_mode<synchronous>, transform_indices = @transform_5, window_bounds = array<i64: 1, 8>}, {pipeline_mode = #tpu.pipeline_mode<synchronous>, transform_indices = @transform_6, window_bounds = array<i64: 1, 1>}, {transform_indices = @transform_7, window_bounds = array<i64: 1, 128>}]} {
    %c0 = arith.constant 0 : index
    %c0_0 = arith.constant 0 : index
    %0 = vector.load %arg1[%c0, %c0_0] : memref<128x15xf32, #tpu.memory_space<vmem>>, vector<128x15xf32>
    %c0_1 = arith.constant 0 : index
    %c0_2 = arith.constant 0 : index
    %1 = vector.load %arg2[%c0_1, %c0_2] : memref<12x15xf32, #tpu.memory_space<vmem>>, vector<12x15xf32>
    %cst = arith.constant dense<0.000000e+00> : vector<12x128xf32>
    %2 = tpu.matmul %1, %0, %cst {dimension_numbers = #tpu.dot_dimension_numbers<[1], [1], [0], [0], [0, 0, 1, 0], [], []>} : vector<12x15xf32>, vector<128x15xf32>, vector<12x128xf32> -> vector<12x128xf32>
    %c0_3 = arith.constant 0 : index
    %c0_4 = arith.constant 0 : index
    %3 = vector.load %arg3[%c0_3, %c0_4] : memref<12x1xf32, #tpu.memory_space<vmem>>, vector<12x1xf32>
    %4 = vector.broadcast %3 : vector<12x1xf32> to vector<12x128xf32>
    %5 = arith.addf %2, %4 : vector<12x128xf32>
    %cst_5 = arith.constant 2.000000e+01 : f32
    %6 = vector.broadcast %cst_5 : f32 to vector<12x128xf32>
    %7 = arith.minimumf %5, %6 : vector<12x128xf32>
    %8 = math.exp %7 : vector<12x128xf32>
    %cst_6 = arith.constant 2.000000e+00 : f32
    %9 = vector.broadcast %cst_6 : f32 to vector<12x128xf32>
    %10 = arith.addf %8, %9 : vector<12x128xf32>
    %11 = arith.mulf %8, %10 : vector<12x128xf32>
    %cst_7 = arith.constant 2.000000e+01 : f32
    %12 = vector.broadcast %cst_7 : f32 to vector<12x128xf32>
    %13 = arith.cmpf ogt, %5, %12 : vector<12x128xf32>
    %14 = arith.mulf %5, %11 : vector<12x128xf32>
    %cst_8 = arith.constant 2.000000e+00 : f32
    %15 = vector.broadcast %cst_8 : f32 to vector<12x128xf32>
    %16 = arith.addf %11, %15 : vector<12x128xf32>
    %17 = tpu.reciprocal %16 {approx = true} : vector<12x128xf32> -> vector<12x128xf32>
    %18 = arith.mulf %14, %17 : vector<12x128xf32>
    %19 = arith.select %13, %5, %18 : vector<12x128xi1>, vector<12x128xf32>
    %c0_9 = arith.constant 0 : index
    %c0_10 = arith.constant 0 : index
    %20 = vector.load %arg4[%c0_9, %c0_10] : memref<8x12xf32, #tpu.memory_space<vmem>>, vector<8x12xf32>
    %cst_11 = arith.constant dense<0.000000e+00> : vector<8x128xf32>
    %21 = tpu.matmul %20, %19, %cst_11 {dimension_numbers = #tpu.dot_dimension_numbers<[1], [0], [0], [1], [0, 0, 1, 1], [], []>} : vector<8x12xf32>, vector<12x128xf32>, vector<8x128xf32> -> vector<8x128xf32>
    %c0_12 = arith.constant 0 : index
    %c0_13 = arith.constant 0 : index
    %22 = vector.load %arg5[%c0_12, %c0_13] : memref<8x1xf32, #tpu.memory_space<vmem>>, vector<8x1xf32>
    %23 = vector.broadcast %22 : vector<8x1xf32> to vector<8x128xf32>
    %24 = arith.addf %21, %23 : vector<8x128xf32>
    %cst_14 = arith.constant 2.000000e+01 : f32
    %25 = vector.broadcast %cst_14 : f32 to vector<8x128xf32>
    %26 = arith.minimumf %24, %25 : vector<8x128xf32>
    %27 = math.exp %26 : vector<8x128xf32>
    %cst_15 = arith.constant 2.000000e+00 : f32
    %28 = vector.broadcast %cst_15 : f32 to vector<8x128xf32>
    %29 = arith.addf %27, %28 : vector<8x128xf32>
    %30 = arith.mulf %27, %29 : vector<8x128xf32>
    %cst_16 = arith.constant 2.000000e+01 : f32
    %31 = vector.broadcast %cst_16 : f32 to vector<8x128xf32>
    %32 = arith.cmpf ogt, %24, %31 : vector<8x128xf32>
    %33 = arith.mulf %24, %30 : vector<8x128xf32>
    %cst_17 = arith.constant 2.000000e+00 : f32
    %34 = vector.broadcast %cst_17 : f32 to vector<8x128xf32>
    %35 = arith.addf %30, %34 : vector<8x128xf32>
    %36 = tpu.reciprocal %35 {approx = true} : vector<8x128xf32> -> vector<8x128xf32>
    %37 = arith.mulf %33, %36 : vector<8x128xf32>
    %38 = arith.select %32, %24, %37 : vector<8x128xi1>, vector<8x128xf32>
    %c0_18 = arith.constant 0 : index
    %c0_19 = arith.constant 0 : index
    %39 = vector.load %arg6[%c0_18, %c0_19] : memref<1x8xf32, #tpu.memory_space<vmem>>, vector<1x8xf32>
    %cst_20 = arith.constant dense<0.000000e+00> : vector<1x128xf32>
    %40 = tpu.matmul %39, %38, %cst_20 {dimension_numbers = #tpu.dot_dimension_numbers<[1], [0], [0], [1], [0, 0, 1, 1], [], []>} : vector<1x8xf32>, vector<8x128xf32>, vector<1x128xf32> -> vector<1x128xf32>
    %c0_21 = arith.constant 0 : index
    %c0_22 = arith.constant 0 : index
    %41 = vector.load %arg7[%c0_21, %c0_22] : memref<1x1xf32, #tpu.memory_space<vmem>>, vector<1x1xf32>
    %42 = vector.broadcast %41 : vector<1x1xf32> to vector<1x128xf32>
    %43 = arith.addf %40, %42 : vector<1x128xf32>
    %cst_23 = arith.constant 5.000000e-01 : f32
    %44 = vector.broadcast %cst_23 : f32 to vector<1x128xf32>
    %45 = arith.mulf %44, %43 : vector<1x128xf32>
    %46 = math.tanh %45 : vector<1x128xf32>
    %cst_24 = arith.constant 1.000000e+00 : f32
    %47 = vector.broadcast %cst_24 : f32 to vector<1x128xf32>
    %48 = arith.addf %46, %47 : vector<1x128xf32>
    %cst_25 = arith.constant 5.000000e-01 : f32
    %49 = vector.broadcast %cst_25 : f32 to vector<1x128xf32>
    %50 = arith.mulf %49, %48 : vector<1x128xf32>
    %c0_26 = arith.constant 0 : index
    %c0_27 = arith.constant 0 : index
    %51 = vector.load %arg8[%c0_26, %c0_27] : memref<1x128xf32, #tpu.memory_space<vmem>>, vector<1x128xf32>
    tpu.vector_store %arg8[%c0_26, %c0_27], %50 {strides = array<i32>} : memref<1x128xf32, #tpu.memory_space<vmem>>, vector<1x128xf32>,
    return
  }
  func.func @transform_0(%arg0: i32) -> (i32, i32) {
    %c0_i32 = arith.constant 0 : i32
    %c0_i32_0 = arith.constant 0 : i32
    return %arg0, %c0_i32 : i32, i32
  }
  func.func @transform_1(%arg0: i32) -> (i32, i32) {
    %c0_i32 = arith.constant 0 : i32
    %c0_i32_0 = arith.constant 0 : i32
    %c0_i32_1 = arith.constant 0 : i32
    return %c0_i32, %c0_i32_0 : i32, i32
  }
  func.func @transform_2(%arg0: i32) -> (i32, i32) {
    %c0_i32 = arith.constant 0 : i32
    %c0_i32_0 = arith.constant 0 : i32
    %c0_i32_1 = arith.constant 0 : i32
    return %c0_i32, %c0_i32_0 : i32, i32
  }
  func.func @transform_3(%arg0: i32) -> (i32, i32) {
    %c0_i32 = arith.constant 0 : i32
    %c0_i32_0 = arith.constant 0 : i32
    %c0_i32_1 = arith.constant 0 : i32
    return %c0_i32, %c0_i32_0 : i32, i32
  }
  func.func @transform_4(%arg0: i32) -> (i32, i32) {
    %c0_i32 = arith.constant 0 : i32
    %c0_i32_0 = arith.constant 0 : i32
    %c0_i32_1 = arith.constant 0 : i32
    return %c0_i32, %c0_i32_0 : i32, i32
  }
  func.func @transform_5(%arg0: i32) -> (i32, i32) {
    %c0_i32 = arith.constant 0 : i32
    %c0_i32_0 = arith.constant 0 : i32
    %c0_i32_1 = arith.constant 0 : i32
    return %c0_i32, %c0_i32_0 : i32, i32
  }
  func.func @transform_6(%arg0: i32) -> (i32, i32) {
    %c0_i32 = arith.constant 0 : i32
    %c0_i32_0 = arith.constant 0 : i32
    %c0_i32_1 = arith.constant 0 : i32
    return %c0_i32, %c0_i32_0 : i32, i32
  }
  func.func @transform_7(%arg0: i32) -> (i32, i32) {
    %c0_i32 = arith.constant 0 : i32
    %c0_i32_0 = arith.constant 0 : i32
    return %c0_i32, %arg0 : i32, i32
  }
}

</mosaic_0001>

<bundles_post_ra>
// kernel: model_forward.1
= control target key start
LH: loop header
LB: loop body
LE: loop exit
PB: predicated region body
PF: predicated region fallthrough
CT: control target
= control target key end

     0   :  { %s772_s0 = inlined_call_operand.vmem [shape: f32[8,15], index: 0, kind: input, shape index: {}]   ;;  %s773_s1 = inlined_call_operand.vmem [shape: f32[12,15], index: 1, kind: input, shape index: {}]   ;;  %s774_s2 = inlined_call_operand.vmem [shape: f32[12,1], index: 2, kind: input, shape index: {}]   ;;  %s775_s3 = inlined_call_operand.vmem [shape: f32[8,12], index: 3, kind: input, shape index: {}]   ;;  %s776_s4 = inlined_call_operand.vmem [shape: f32[8,1], index: 4, kind: input, shape index: {}]   ;;  %s777_s5 = inlined_call_operand.vmem [shape: f32[1,8], index: 5, kind: input, shape index: {}]   ;;  %s778_s6 = inlined_call_operand.<no memory space> [shape: f32[1,1], index: 6, kind: input, shape index: {}]   ;;  %s779_s7 = inlined_call_operand.hbm [shape: f32[1,8], index: 7, kind: output, shape index: {}]  }
   0x1   :  { %v12_v0 = vstv %s778_s6 }
   0x2   :  { %13 = vst [vmem:[#allocation2] sm:$0x1] %v12_v0 }
   0x3   :  { %v29_v1 = vld [vmem:[%s772_s0] sm:$0xff]  ;;  %v30_v2 = vld [vmem:[%s772_s0 + $0x8] sm:$0xff]  ;;  %vm59_vm0 = vcmask 121856   ;;  %v31_v3 = vld [vmem:[%s772_s0 + $0x10] sm:$0xff]  ;;  %v600_v7 = vmov 0  }
   0x4   :  { %v502_v4 = vpack.c.bf16 %v30_v2, %v29_v1  ;;  %vm660_vm1 = vmpackc.low %vm59_vm0, %vm59_vm0  ;;  %v32_v6 = vld [vmem:[%s772_s0 + $0x18] sm:$0xff]  ;;  %560 = vset.pattern.permute.xlu0 %v600_v7  ;;  %561 = vset.pattern.permute.xlu1 %v600_v7  ;;  %v45_v9 = vld [vmem:[%s773_s1] sm:$0xff] }
   0x5   :  { %v508_v8 = vpack.c.bf16 %v32_v6, %v31_v3  ;;  %v33_v10 = vld [vmem:[%s772_s0 + $0x20] sm:$0xff]  ;;  %v34_v11 = vld [vmem:[%s772_s0 + $0x28] sm:$0xff]  ;;  %487 = vmatprep.mubr.msk.f32.mxu0 %vm59_vm0, %v45_v9 }
   0x6   :  { %504 = vmatprep.subr.msk.bf16.mxu0 %vm660_vm1, %v502_v4  ;;  %v47_v12 = vld [vmem:[%s774_s2] sm:$0xff] }
   0x7   :  { %507 = vmatpush3.bf16.xpose.msk.msra.mxu0 %vm660_vm1, %v502_v4  ;;  %51 = vperm.xlu0 %560, %v47_v12  }
   0x8   :  { %510 = vmatprep.subr.msk.bf16.mxu0 %vm660_vm1, %v508_v8 }
   0x9   :  { %14 = vsyncpa [#allocation4], 0  ;;  %v48_v13 = vld [vmem:[%s774_s2 + $0x8] sm:$0xf]  ;;  %v514_v14 = vpack.c.bf16 %v34_v11, %v33_v10  ;;  %v35_v15 = vld [vmem:[%s772_s0 + $0x30] sm:$0xff]  ;;  %v601_v31 = vmov 0.0|0.0  }
   0xa   :  { %v36_v16 = vld [vmem:[%s772_s0 + $0x38] sm:$0xff]  ;;  %v37_v18 = vld [vmem:[%s772_s0 + $0x40] sm:$0xff]  ;;  %v38_v19 = vld [vmem:[%s772_s0 + $0x48] sm:$0xff]  ;;  %550 = vmatprep.subr.bf16.mxu1 %v601_v31  ;;  %vm602_vm2 = vmmov 0   ;;  %v603_v32 = vmov 0.0   ;;  %vm222_vm3 = vcmask 1043456  }
   0xb   :  { %56 = vperm.xlu0 %560, %v48_v13   ;;  %v520_v17 = vpack.c.bf16 %v36_v16, %v35_v15  ;;  %v526_v20 = vpack.c.bf16 %v38_v19, %v37_v18  ;;  %v39_v21 = vld [vmem:[%s772_s0 + $0x50] sm:$0xff]  ;;  %v40_v22 = vld [vmem:[%s772_s0 + $0x58] sm:$0xff]  ;;  %v41_v24 = vld [vmem:[%s772_s0 + $0x60] sm:$0xff]  ;;  %494 = vmatprep.mubr.msk.f32.mxu1 %vm602_vm2, %v603_v32  ;;  %vm604_vm6 = vmmov 1   ;;  %vm218_vm8 = vcmask 97280   ;;  %s605_s19 = smov [#allocation3]  }
   0xc   :  { %v532_v23 = vpack.c.bf16 %v40_v22, %v39_v21  ;;  %v42_v25 = vld [vmem:[%s772_s0 + $0x68] sm:$0xff]  ;;  %v43_v27 = vld [vmem:[%s772_s0 + $0x70] sm:$0xff]  ;;  %v44_v28 = vld [vmem:[%s772_s0 + $0x78] sm:$0xff]  ;;  %vm318_vm10 = vcmask 64512   ;;  %s403_s20 = sshll.u32 %s605_s19, 4  ;;  %s404_s20 = int_to_ptr.vmem [resolvable:$true] %s403_s20 }
   0xd   :  { %v538_v26 = vpack.c.bf16 %v42_v25, %v41_v24  ;;  %v544_v29 = vpack.c.bf16 %v44_v28, %v43_v27  ;;  %v46_v30 = vld [vmem:[%s773_s1 + $0x8] sm:$0xf]  ;;  %v212_v33 = vld [vmem:[%s776_s4] sm:$0xff]  ;;  %vm552_vm7 = vmpackc.low %vm222_vm3, %vm604_vm6  ;;  %s580_s21 = scalar_lea.vmem %s404_s20, 32  ;;  %p581_p1 = scmp.lt.s32.totalorder %s404_s20, %s404_s20 }
   0xe   :  { %215 = vperm.xlu1 %561, %v212_v33   ;;  %v308_v34 = vld [vmem:[#allocation2] sm:$0x1] }
   0xf   :  { %513 = vmatpush3.bf16.xpose.msk.msra.mxu0 %vm660_vm1, %v508_v8  ;;  %v211_v62 = vld [vmem:[%s775_s3] sm:$0xff] }
  0x10   :  { %516 = vmatprep.subr.msk.bf16.mxu0 %vm660_vm1, %v514_v14  ;;  %v307_v12 = vld [vmem:[%s777_s5] sm:$0x1]  ;;  %s576_s5 = scalar_lea.vmem %s404_s20, 16 }
  0x11   :  { %p577_p0 = scmp.ne.s32.totalorder %s404_s20, %s576_s5  ;;  %p582_p2 = scmp.lt.s32.totalorder %s580_s21, %s576_s5 }
  0x12   :  { %311 = vperm.xlu1 %561, %v308_v34  }
  0x13   :  { %p583_p3 = por %p582_p2, %p581_p1 }
  0x15   :  { %p584_p4 = pnand %p583_p3, %p577_p0 }
  0x17   :  { %519 = vmatpush3.bf16.xpose.msk.msra.mxu0 %vm660_vm1, %v514_v14  ;;  %v314_v14 = vlaneseq }
  0x18   :  { %522 = vmatprep.subr.msk.bf16.mxu0 %vm660_vm1, %v520_v17 }
  0x19   :  { %v315_v15 = vshrl.u32 %v314_v14, 7 }
  0x1b   :  { %v316_v16 = vsub.s32 0, %v315_v15 }
  0x1f   :  { %525 = vmatpush3.bf16.xpose.msk.msra.mxu0 %vm660_vm1, %v520_v17 }
  0x20   :  { %528 = vmatprep.subr.msk.bf16.mxu0 %vm660_vm1, %v526_v20 }
  0x27   :  { %531 = vmatpush3.bf16.xpose.msk.msra.mxu0 %vm660_vm1, %v526_v20 }
  0x28   :  { %534 = vmatprep.subr.msk.bf16.mxu0 %vm660_vm1, %v532_v23 }
  0x2f   :  { %537 = vmatpush3.bf16.xpose.msk.msra.mxu0 %vm660_vm1, %v532_v23 }
  0x30   :  { %540 = vmatprep.subr.msk.bf16.mxu0 %vm660_vm1, %v538_v26 }
  0x37   :  { %543 = vmatpush3.bf16.xpose.msk.msra.mxu0 %vm660_vm1, %v538_v26 }
  0x38   :  { %546 = vmatprep.subr.msk.bf16.mxu0 %vm660_vm1, %v544_v29 }
  0x3f   :  { %549 = vmatpush3.bf16.xpose.msk.msra.mxu0 %vm660_vm1, %v544_v29 }
  0x46   :  { %488 = vmatmul.mubr.msk.f32.vlgmr.msra.gmra.mrb[0].mxu0 %vm59_vm0, %v46_v30 }
  0x86   :  { %v52_v35 = vpop.permute.xlu0 %51 }
  0x8a   :  { %v57_v36 = vpop.permute.xlu0 %56 }
  0x8d   :  { %v216_v63 = vpop.permute.xlu1 %215 }
  0x91   :  { %v312_v17 = vpop.permute.xlu1 %311 }
  0x92   :  { %v317_v18 = vrot.slane %v312_v17, %v316_v16 }
 0x119   :  { %v489_v37 = vpop.f32.mrb[0].mxu0 }
 0x11a   :  { %v186_v38 = vadd.f32 %v489_v37, %v57_v36  ;;  %v180_v39 = vpop.f32.mrb[1].mxu0 }
 0x11b   :  { %v181_v40 = vadd.f32 %v180_v39, %v52_v35 }
 0x11c   :  { %v190_v41 = vmin.f32 %v186_v38, 20.0  ;;  %vm200_vm4 = vcmp.gt.f32.partialorder %v186_v38, 20.0 }
 0x11d   :  { %v189_v42 = vmin.f32 %v181_v40, 20.0  ;;  %vm199_vm5 = vcmp.gt.f32.partialorder %v181_v40, 20.0 }
 0x11e   :  { %v193_v43 = vmul.f32 1.442695, %v190_v41 }
 0x11f   :  { %v191_v44 = vmul.f32 1.442695, %v189_v42 }
 0x120   :  { %562 = vpow2.f32 %v193_v43 }
 0x121   :  { %564 = vpow2.f32 %v191_v44 }
 0x12a   :  { %v563_v45 = vpop.eup %562 }
 0x12b   :  { %v565_v46 = vpop.eup %564  ;;  %v196_v47 = vadd.f32 2.0, %v563_v45 }
 0x12c   :  { %v195_v48 = vadd.f32 2.0, %v565_v46 }
 0x12d   :  { %v198_v49 = vmul.f32 %v563_v45, %v196_v47 }
 0x12e   :  { %v197_v50 = vmul.f32 %v565_v46, %v195_v48 }
 0x12f   :  { %v204_v51 = vadd.f32 2.0, %v198_v49  ;;  %v202_v53 = vmul.f32 %v198_v49, %v186_v38 }
 0x130   :  { %v203_v52 = vadd.f32 2.0, %v197_v50  ;;  %v201_v55 = vmul.f32 %v197_v50, %v181_v40 }
 0x131   :  { %566 = vrcp.f32 %v204_v51 }
 0x132   :  { %568 = vrcp.f32 %v203_v52 }
 0x13b   :  { %v567_v54 = vpop.eup %566 }
 0x13c   :  { %v569_v56 = vpop.eup %568  ;;  %v208_v57 = vmul.f32 %v567_v54, %v202_v53 }
 0x13d   :  { %v207_v58 = vmul.f32 %v569_v56, %v201_v55 }
 0x13e   :  { %v210_v59 = vsel %vm200_vm4, %v186_v38, %v208_v57 }
 0x13f   :  { %v209_v60 = vsel %vm199_vm5, %v181_v40, %v207_v58 }
 0x140   :  { %v551_v61 = vpack.c.bf16 %v210_v59, %v209_v60 }
 0x142   :  { %553 = vmatpush3.bf16.msk.msra.mxu1 %vm552_vm7, %v551_v61 }
 0x143   :  { %497 = vmatprep.subr.mxu1 %v603_v32 }
 0x145   :  { %495 = vmatmul.mubr.msk.f32.vlgmr.msra.gmra.mrb[0].mxu1 %vm218_vm8, %v211_v62 }
 0x146   :  { %499 = vmatprep.mubr.msk.f32.mxu1 %vm602_vm2, %v603_v32 }
 0x218   :  { %v292_v0 = vpop.f32.mrb[0].mxu1 }
 0x219   :  { %v293_v1 = vadd.f32 %v292_v0, %v216_v63  ;;  %v496_v2 = vpop.f32.mrb[1].mxu1 }
 0x21b   :  { %v296_v3 = vmin.f32 %v293_v1, 20.0  ;;  %vm301_vm9 = vcmp.gt.f32.partialorder %v293_v1, 20.0 }
 0x21d   :  { %v297_v4 = vmul.f32 1.442695, %v296_v3 }
 0x21f   :  { %570 = vpow2.f32 %v297_v4 }
 0x229   :  { %v571_v5 = vpop.eup %570 }
 0x22a   :  { %v299_v6 = vadd.f32 2.0, %v571_v5 }
 0x22c   :  { %v300_v7 = vmul.f32 %v571_v5, %v299_v6 }
 0x22e   :  { %v303_v8 = vadd.f32 2.0, %v300_v7  ;;  %v302_v9 = vmul.f32 %v300_v7, %v293_v1 }
 0x230   :  { %572 = vrcp.f32 %v303_v8 }
 0x23a   :  { %v573_v10 = vpop.eup %572 }
 0x23b   :  { %v305_v11 = vmul.f32 %v573_v10, %v302_v9 }
 0x23d   :  { %v306_v13 = vsel %vm301_vm9, %v293_v1, %v305_v11 }
 0x23e   :  { %498 = vmatpush3.msra.mxu1 %v306_v13 }
 0x23f   :  { %500 = vmatmul.mubr.msk.f32.vlgmr.msra.gmra.mrb[2].mxu1 %vm318_vm10, %v307_v12 }
 0x312   :  { %v388_v19 = vpop.f32.mrb[2].mxu1 }
 0x313   :  { %v389_v20 = vadd.f32 %v388_v19, %v317_v18  ;;  %v501_v21 = vpop.f32.mrb[3].mxu1 }
 0x315   :  { %v392_v22 = vmul.f32 0.5, %v389_v20 }
 0x317   :  { %574 = vtanh.f32 %v392_v22 }
 0x321   :  { %v575_v23 = vpop.eup %574 }
 0x322   :  { %v394_v24 = vadd.f32 1.0, %v575_v23 }
 0x324   :  { %v395_v25 = vmul.f32 0.5, %v394_v24 }
 0x326   :  { %396 = vst [vmem:[#allocation3] sm:$0x1] %v395_v25 }
 0x327   :  { %587 = shalt.err (!%p584_p4)
}
 0x328   :  { %s588_s2 = scalar_lea.hbm %s779_s7, 16 }
 0x329   :  { %p589_p5 = scmp.ne.s32.totalorder %s779_s7, %s588_s2  ;;  %p592_p6 = scmp.lt.u32.totalorder %s588_s2, %s779_s7 }
 0x32b   :  { %p594_p7 = pnand %p592_p6, %p589_p5 }
 0x32d   :  { %597 = shalt.err (!%p594_p7)
}
 0x32e   :  { %406 = dma.vmem_to_hbm [thread:$0]  %s404_s20, 16, %s779_s7, [#allocation4]  }
 0x32f   :  { %598 = dma.done.wait [#allocation4], 16  }
 0x330   :  { %599 = vsyncadd [#allocation4], 4294967280 }
 0x331   :  { %410 = vsyncpa [#allocation4], 1 }

</bundles_post_ra>
